<compile_context>
chip_gen: v6e
topology: v6e:2x2x1
jax: 0.10.0
libtpu: 0.0.40
codegen_flags: <defaults>
</compile_context>

<pallas_src>
import functools

import jax
import jax.numpy as jnp
from jax.experimental import pallas as pl
from jax.experimental.pallas import tpu as pltpu

_LANE = 128
_MAX_TILE_LANES = 32768          # caps the unrolled lane-chunk loop (<=256 chunks)
_MIB = 1024 * 1024


def _cls_head_kernel(x_ref, w1_ref, b1_ref, w2_ref, b2_ref, o_ref, max_sc,
                     *, hw, needs_mask):
    """One (batch-tile, hw-tile) grid step.

    x_ref:   (tile_b, C, tile_hw) input tile, native dtype
    w*/b*:   dense-layer params, resident across the HW grid axis
    o_ref:   (1, tile_b, n_classes) output tile (written on the last HW step)
    max_sc:  (tile_b, C, 128) f32 lane-wide running max (persists across HW steps)
    """
    k = pl.program_id(1)
    nk = pl.num_programs(1)
    tile_b, c, t_hw = x_ref.shape

    @pl.when(k == 0)
    def _init():
        max_sc[...] = jnp.full_like(max_sc, -jnp.inf)

    def accumulate(x):
        # Lane-chunked running max: the hot loop is pure vmax (VALU); the
        # 128->1 cross-lane reduce and the f32 cast of the pooled values are
        # deferred to the epilogue / touch only a (tile_b, C, 128) slab.
        if t_hw % _LANE == 0:
            m = x[:, :, 0:_LANE]
            for j in range(1, t_hw // _LANE):
                m = jnp.maximum(m, x[:, :, j * _LANE:(j + 1) * _LANE])
        else:
            # Single full-extent, ragged tile (t_hw == hw, not 128-aligned):
            # one cross-lane reduce is unavoidable, but it runs exactly once.
            m = jnp.max(x, axis=2, keepdims=True)
        max_sc[...] = jnp.maximum(max_sc[...], m.astype(jnp.float32))

    if needs_mask:
        # Only the final HW tile runs past the array; keep the mask (iota +
        # compare + select over the whole tile) out of the steady-state loop.
        @pl.when(k != nk - 1)
        def _steady():
            accumulate(x_ref[...])

        @pl.when(k == nk - 1)
        def _tail():
            x = x_ref[...]
            lane = jax.lax.broadcasted_iota(jnp.int32, x.shape, 2)
            valid = (k * t_hw + lane) < hw
            accumulate(jnp.where(valid, x, jnp.array(-jnp.inf, x.dtype)))
    else:
        accumulate(x_ref[...])

    @pl.when(k == nk - 1)
    def _epilogue():
        pooled = jnp.max(max_sc[...], axis=2)                    # (tile_b, C) f32
        # Linear(C -> H1) + ReLU  (weights pre-transposed to (in, out))
        h = jnp.dot(pooled, w1_ref[...].astype(jnp.float32),
                    preferred_element_type=jnp.float32)
        h = jnp.maximum(h + b1_ref[...].astype(jnp.float32), 0.0)
        # Linear(H1 -> n_classes)
        y = jnp.dot(h, w2_ref[...].astype(jnp.float32),
                    preferred_element_type=jnp.float32)
        y = y + b2_ref[...].astype(jnp.float32)
        # Sigmoid finish
        o_ref[0] = jax.nn.sigmoid(y).astype(o_ref.dtype)


def _sublane_pad(c, itemsize):
    """VMEM rows actually allocated for a second-minor dim of size c."""
    packing = max(1, 4 // itemsize)          # f32: 1, bf16/f16: 2, int8/fp8: 4
    sub = 8 * packing                        # sublane tile: 8 / 16 / 32
    return ((c + sub - 1) // sub) * sub


def _vmem_capacity_bytes():
    try:
        cap = getattr(pltpu.get_tpu_info(), "vmem_capacity_bytes", None)
        if cap:
            return int(cap)
    except Exception:
        pass
    return 64 * _MIB                         # conservative fallback (v7x per-TC)


def _pick_tile_b(batch, c_pad, itemsize, budget_bytes):
    """Largest proper divisor of batch whose double-buffered tile still allows
    tile_hw >= 512 lanes within the budget (>=2 'parallel' grid steps so both
    v7x TensorCores stream half the input).  Always divides batch."""
    if batch <= 1:
        # TODO(synk): for B == 1 on v7x, split the HW reduction across cores.
        return 1
    for d in range(batch // 2, 0, -1):
        if batch % d == 0 and 2 * d * c_pad * 512 * itemsize <= budget_bytes:
            return d
    return 1


def _pick_tile_hw(hw, tile_b, c_pad, itemsize, budget_bytes):
    """Largest lane count (multiple of 128, capped) whose double-buffered
    (tile_b, c_pad, tile_hw) tile fits the stream budget."""
    per_lane = 2 * tile_b * c_pad * itemsize          # double-buffered bytes/lane
    lanes = budget_bytes // max(1, per_lane)
    lanes = min(lanes, _MAX_TILE_LANES)
    lanes = max(_LANE, (lanes // _LANE) * _LANE)
    if hw <= lanes:
        return hw                                     # full extent (always legal)
    return lanes


def classification_head(x_nchw, mri_features, params, *, tile_hw=None, tile_b=None):
    """Forward pass of ClassificationHead (maxpool path, no MRI features).

    x_nchw: (B, C, H, W) float array (f32/bf16/f16; streamed in native dtype).
    mri_features: unused for the default config (use_MRI_features=False).
    params: dict with w1 (C, H1), b1 (1, H1), w2 (H1, n_classes), b2 (1, n_classes)
    """
    del mri_features  # use_MRI_features=False in the default config
    if not jnp.issubdtype(x_nchw.dtype, jnp.floating):
        raise ValueError("classification_head expects a floating dtype input")
    # TODO(synk): fp8 dtypes (no inf) are not supported by the -inf tail mask.

    B, C, H, W = x_nchw.shape
    HW = H * W
    x = x_nchw.reshape(B, C, HW)          # no dtype cast: stream native dtype

    w1, b1, w2, b2 = params["w1"], params["b1"], params["w2"], params["b2"]
    H1 = w1.shape[1]
    n_classes = w2.shape[1]

    itemsize = x.dtype.itemsize
    c_pad = _sublane_pad(C, itemsize)     # account for sublane padding of C
    vmem_cap = _vmem_capacity_bytes()
    # Stream budget: 48 MiB on 128-MiB-VMEM parts (v5e/v6e), 32 MiB on v7x.
    stream_budget = min(vmem_cap // 2, 48 * _MIB)

    if tile_b is None:
        tile_b = _pick_tile_b(B, c_pad, itemsize, stream_budget)
    if B % tile_b != 0:
        raise ValueError(f"tile_b={tile_b} must divide batch={B}")
    if tile_hw is None:
        tile_hw = _pick_tile_hw(HW, tile_b, c_pad, itemsize, stream_budget)
    if tile_hw != HW and tile_hw % _LANE != 0:
        raise ValueError(f"tile_hw={tile_hw} must be a multiple of 128 or equal HW={HW}")

    nb = B // tile_b
    grid = (nb, pl.cdiv(HW, tile_hw))
    needs_mask = (HW % tile_hw) != 0

    # Explicit scoped-VMEM limit sized for the double-buffered stream + small
    # resident weights/scratch, clamped to the device's physical VMEM.
    in_bytes = 2 * tile_b * c_pad * tile_hw * itemsize
    vmem_limit = min(max(in_bytes + 8 * _MIB, 32 * _MIB), vmem_cap)

    kernel = functools.partial(_cls_head_kernel, hw=HW, needs_mask=needs_mask)

    cost = pl.CostEstimate(
        flops=int(B * C * HW + 2 * B * C * H1 + B * H1 + 2 * B * H1 * n_classes),
        transcendentals=int(B * n_classes),
        bytes_accessed=int(x.nbytes + w1.nbytes + b1.nbytes + w2.nbytes
                           + b2.nbytes + B * n_classes * 4),
    )

    out = pl.pallas_call(
        kernel,
        out_shape=jax.ShapeDtypeStruct((nb, tile_b, n_classes), jnp.float32),
        grid_spec=pltpu.PrefetchScalarGridSpec(
            num_scalar_prefetch=0,
            grid=grid,
            in_specs=[
                pl.BlockSpec((tile_b, C, tile_hw), lambda b, k: (b, 0, k)),
                pl.BlockSpec((C, H1), lambda b, k: (0, 0)),          # resident
                pl.BlockSpec((1, H1), lambda b, k: (0, 0)),          # resident
                pl.BlockSpec((H1, n_classes), lambda b, k: (0, 0)),  # resident
                pl.BlockSpec((1, n_classes), lambda b, k: (0, 0)),   # resident
            ],
            # Last two dims equal the full array dims -> legal for any tile_b.
            out_specs=pl.BlockSpec((1, tile_b, n_classes), lambda b, k: (b, 0, 0)),
            scratch_shapes=[pltpu.VMEM((tile_b, C, _LANE), jnp.float32)],
        ),
        compiler_params=pltpu.CompilerParams(
            dimension_semantics=("parallel", "arbitrary"),
            vmem_limit_bytes=int(vmem_limit)),
        cost_estimate=cost,
    )(x, w1, b1, w2, b2)
    return out.reshape(B, n_classes)


def init_params(key, in_channels, lin_channels=(64,), n_classes=1):
    # Deterministic synthetic init; Linear weights stored pre-transposed as (in, out).
    keys = jax.random.split(key, 4)
    h1 = lin_channels[0]
    w1 = jax.random.normal(keys[0], (in_channels, h1), jnp.float32) * 0.1
    b1 = jax.random.normal(keys[1], (1, h1), jnp.float32) * 0.1
    w2 = jax.random.normal(keys[2], (h1, n_classes), jnp.float32) * 0.1
    b2 = jax.random.normal(keys[3], (1, n_classes), jnp.float32) * 0.1
    return {"w1": w1, "b1": b1, "w2": w2, "b2": b2}


def _reference(x_nchw, params):
    # Pure-JAX reference for correctness check.
    B = x_nchw.shape[0]
    pooled = jnp.max(x_nchw.reshape(B, x_nchw.shape[1], -1).astype(jnp.float32), axis=2)
    h = jnp.maximum(pooled @ params["w1"] + params["b1"], 0.0)
    return jax.nn.sigmoid(h @ params["w2"] + params["b2"])


if __name__ == "__main__":
    key = jax.random.PRNGKey(0)
    k_x, k_x2, k_mri, k_p = jax.random.split(key, 4)

    B, C, H, W = 2, 4, 16, 16
    x = jax.random.normal(k_x, (B, C, H, W), jnp.float32)
    mri_features = jax.random.normal(k_mri, (B, 8), jnp.float32)  # ignored (default cfg)
    params = init_params(k_p, in_channels=C, lin_channels=(64,), n_classes=1)

    # tile_hw=128 forces HW=256 into 2 reduction steps -> exercises the running
    # max init / accumulate / epilogue path (with tile_b auto-split to 1 -> 2
    # parallel batch steps).
    out = jax.block_until_ready(
        classification_head(x, mri_features, params, tile_hw=128))
    ref = _reference(x, params)
    assert out.shape == (B, 1)
    assert jnp.allclose(out, ref, atol=1e-5, rtol=1e-5)

    # Default (auto) tiling: single full-extent spatial tile.
    out_auto = jax.block_until_ready(classification_head(x, mri_features, params))
    assert jnp.allclose(out_auto, ref, atol=1e-5, rtol=1e-5)

    # HW = 400 not divisible by 128 -> exercises the -inf padding mask, now
    # confined to the final (partially out-of-bounds) spatial tile.
    x2 = jax.random.normal(k_x2, (B, C, 20, 20), jnp.float32)
    out2 = jax.block_until_ready(
        classification_head(x2, mri_features, params, tile_hw=128))
    ref2 = _reference(x2, params)
    assert jnp.allclose(out2, ref2, atol=1e-5, rtol=1e-5)

    # bf16 input: streamed natively; pooled max cast to f32 is exact.
    x_bf = x.astype(jnp.bfloat16)
    out_bf = jax.block_until_ready(
        classification_head(x_bf, mri_features, params, tile_hw=128))
    ref_bf = _reference(x_bf, params)
    assert jnp.allclose(out_bf, ref_bf, atol=1e-5, rtol=1e-5)

    # TODO(synk): flatten_or_maxpool='flatten' and use_MRI_features=True variants
    # (feature concatenation) are not exercised by the default config.
    print("KERNEL_OK")
</pallas_src>

<mosaic_0001>
module attributes {stable_mosaic.version = 11 : i64} {
  func.func @_cls_head_kernel(%arg0: i32, %arg1: i32, %arg2: memref<1x4x128xf32, #tpu.memory_space<vmem>>, %arg3: memref<4x64xf32, #tpu.memory_space<vmem>>, %arg4: memref<1x64xf32, #tpu.memory_space<vmem>>, %arg5: memref<64x1xf32, #tpu.memory_space<vmem>>, %arg6: memref<1x1xf32, #tpu.memory_space<vmem>>, %arg7: memref<1x1x1xf32, #tpu.memory_space<vmem>>, %arg8: memref<1x4x128xf32, #tpu.memory_space<vmem>>) attributes {dimension_semantics = [#tpu.dimension_semantics<parallel>, #tpu.dimension_semantics<arbitrary>], iteration_bounds = array<i64: 2, 2>, scalar_prefetch = 0 : i64, scratch_operands = 1 : i64, tpu.core_type = #tpu.core_type<tc>, window_params = [{transform_indices = @transform_0, window_bounds = array<i64: 1, 4, 128>}, {pipeline_mode = #tpu.pipeline_mode<synchronous>, transform_indices = @transform_1, window_bounds = array<i64: 4, 64>}, {pipeline_mode = #tpu.pipeline_mode<synchronous>, transform_indices = @transform_2, window_bounds = array<i64: 1, 64>}, {pipeline_mode = #tpu.pipeline_mode<synchronous>, transform_indices = @transform_3, window_bounds = array<i64: 64, 1>}, {pipeline_mode = #tpu.pipeline_mode<synchronous>, transform_indices = @transform_4, window_bounds = array<i64: 1, 1>}, {transform_indices = @transform_5, window_bounds = array<i64: 1, 1, 1>}]} {
    %c0_i32 = arith.constant 0 : i32
    %0 = arith.cmpi eq, %arg1, %c0_i32 : i32
    %1 = arith.extui %0 : i1 to i32
    %c0_i32_0 = arith.constant 0 : i32
    %2 = arith.cmpi ne, %1, %c0_i32_0 : i32
    scf.if %2 {
      %cst = arith.constant 0xFF800000 : f32
      %10 = vector.broadcast %cst : f32 to vector<1x4x128xf32>
      %c0_10 = arith.constant 0 : index
      %c0_11 = arith.constant 0 : index
      %c0_12 = arith.constant 0 : index
      %11 = vector.load %arg8[%c0_10, %c0_11, %c0_12] : memref<1x4x128xf32, #tpu.memory_space<vmem>>, vector<1x4x128xf32>
      tpu.vector_store %arg8[%c0_10, %c0_11, %c0_12], %10 {strides = array<i32>} : memref<1x4x128xf32, #tpu.memory_space<vmem>>, vector<1x4x128xf32>,
    } else {
    }
    %c0 = arith.constant 0 : index
    %c0_1 = arith.constant 0 : index
    %c0_2 = arith.constant 0 : index
    %3 = vector.load %arg2[%c0, %c0_1, %c0_2] : memref<1x4x128xf32, #tpu.memory_space<vmem>>, vector<1x4x128xf32>
    %c0_3 = arith.constant 0 : index
    %c0_4 = arith.constant 0 : index
    %c0_5 = arith.constant 0 : index
    %4 = vector.load %arg8[%c0_3, %c0_4, %c0_5] : memref<1x4x128xf32, #tpu.memory_space<vmem>>, vector<1x4x128xf32>
    %5 = arith.maximumf %4, %3 : vector<1x4x128xf32>
    %c0_6 = arith.constant 0 : index
    %c0_7 = arith.constant 0 : index
    %c0_8 = arith.constant 0 : index
    %6 = vector.load %arg8[%c0_6, %c0_7, %c0_8] : memref<1x4x128xf32, #tpu.memory_space<vmem>>, vector<1x4x128xf32>
    tpu.vector_store %arg8[%c0_6, %c0_7, %c0_8], %5 {strides = array<i32>} : memref<1x4x128xf32, #tpu.memory_space<vmem>>, vector<1x4x128xf32>,
    %c1_i32 = arith.constant 1 : i32
    %7 = arith.cmpi eq, %arg1, %c1_i32 : i32
    %8 = arith.extui %7 : i1 to i32
    %c0_i32_9 = arith.constant 0 : i32
    %9 = arith.cmpi ne, %8, %c0_i32_9 : i32
    scf.if %9 {
      %c0_10 = arith.constant 0 : index
      %c0_11 = arith.constant 0 : index
      %c0_12 = arith.constant 0 : index
      %10 = vector.load %arg8[%c0_10, %c0_11, %c0_12] : memref<1x4x128xf32, #tpu.memory_space<vmem>>, vector<1x4x128xf32>
      %cst = arith.constant dense<0xFF800000> : vector<1x4xf32>
      %11 = vector.multi_reduction <maximumf>, %10, %cst [2] : vector<1x4x128xf32> to vector<1x4xf32>
      %c0_13 = arith.constant 0 : index
      %c0_14 = arith.constant 0 : index
      %12 = vector.load %arg3[%c0_13, %c0_14] : memref<4x64xf32, #tpu.memory_space<vmem>>, vector<4x64xf32>
      %cst_15 = arith.constant dense<0.000000e+00> : vector<1x64xf32>
      %13 = tpu.matmul %11, %12, %cst_15 {dimension_numbers = #tpu.dot_dimension_numbers<[1], [0], [0], [1], [0, 0, 1, 1], [], []>} : vector<1x4xf32>, vector<4x64xf32>, vector<1x64xf32> -> vector<1x64xf32>
      %c0_16 = arith.constant 0 : index
      %c0_17 = arith.constant 0 : index
      %14 = vector.load %arg4[%c0_16, %c0_17] : memref<1x64xf32, #tpu.memory_space<vmem>>, vector<1x64xf32>
      %15 = arith.addf %13, %14 : vector<1x64xf32>
      %cst_18 = arith.constant 0.000000e+00 : f32
      %16 = vector.broadcast %cst_18 : f32 to vector<1x64xf32>
      %17 = arith.maximumf %15, %16 : vector<1x64xf32>
      %c0_19 = arith.constant 0 : index
      %c0_20 = arith.constant 0 : index
      %18 = vector.load %arg5[%c0_19, %c0_20] : memref<64x1xf32, #tpu.memory_space<vmem>>, vector<64x1xf32>
      %cst_21 = arith.constant dense<0.000000e+00> : vector<1x1xf32>
      %19 = tpu.matmul %17, %18, %cst_21 {dimension_numbers = #tpu.dot_dimension_numbers<[1], [0], [0], [1], [0, 0, 1, 1], [], []>} : vector<1x64xf32>, vector<64x1xf32>, vector<1x1xf32> -> vector<1x1xf32>
      %c0_22 = arith.constant 0 : index
      %c0_23 = arith.constant 0 : index
      %20 = vector.load %arg6[%c0_22, %c0_23] : memref<1x1xf32, #tpu.memory_space<vmem>>, vector<1x1xf32>
      %21 = arith.addf %19, %20 : vector<1x1xf32>
      %22 = arith.negf %21 : vector<1x1xf32>
      %23 = math.exp %22 : vector<1x1xf32>
      %cst_24 = arith.constant 1.000000e+00 : f32
      %24 = vector.broadcast %cst_24 : f32 to vector<1x1xf32>
      %25 = arith.addf %24, %23 : vector<1x1xf32>
      %26 = arith.divf %24, %25 : vector<1x1xf32>
      %c0_25 = arith.constant 0 : index
      %c0_26 = arith.constant 0 : index
      %c0_27 = arith.constant 0 : index
      %27 = vector.load %arg7[%c0_25, %c0_26, %c0_27] : memref<1x1x1xf32, #tpu.memory_space<vmem>>, vector<1x1x1xf32>
      %28 = vector.shape_cast %27 : vector<1x1x1xf32> to vector<1x1xf32>
      %29 = vector.shape_cast %26 : vector<1x1xf32> to vector<1x1x1xf32>
      tpu.vector_store %arg7[%c0_25, %c0_26, %c0_27], %29 {strides = array<i32>} : memref<1x1x1xf32, #tpu.memory_space<vmem>>, vector<1x1x1xf32>,
    } else {
    }
    return
  }
  func.func @transform_0(%arg0: i32, %arg1: i32) -> (i32, i32, i32) {
    %c0_i32 = arith.constant 0 : i32
    %c0_i32_0 = arith.constant 0 : i32
    return %arg0, %c0_i32, %arg1 : i32, i32, i32
  }
  func.func @transform_1(%arg0: i32, %arg1: i32) -> (i32, i32) {
    %c0_i32 = arith.constant 0 : i32
    %c0_i32_0 = arith.constant 0 : i32
    %c0_i32_1 = arith.constant 0 : i32
    return %c0_i32, %c0_i32_0 : i32, i32
  }
  func.func @transform_2(%arg0: i32, %arg1: i32) -> (i32, i32) {
    %c0_i32 = arith.constant 0 : i32
    %c0_i32_0 = arith.constant 0 : i32
    %c0_i32_1 = arith.constant 0 : i32
    return %c0_i32, %c0_i32_0 : i32, i32
  }
  func.func @transform_3(%arg0: i32, %arg1: i32) -> (i32, i32) {
    %c0_i32 = arith.constant 0 : i32
    %c0_i32_0 = arith.constant 0 : i32
    %c0_i32_1 = arith.constant 0 : i32
    return %c0_i32, %c0_i32_0 : i32, i32
  }
  func.func @transform_4(%arg0: i32, %arg1: i32) -> (i32, i32) {
    %c0_i32 = arith.constant 0 : i32
    %c0_i32_0 = arith.constant 0 : i32
    %c0_i32_1 = arith.constant 0 : i32
    return %c0_i32, %c0_i32_0 : i32, i32
  }
  func.func @transform_5(%arg0: i32, %arg1: i32) -> (i32, i32, i32) {
    %c0_i32 = arith.constant 0 : i32
    %c0_i32_0 = arith.constant 0 : i32
    %c0_i32_1 = arith.constant 0 : i32
    return %arg0, %c0_i32, %c0_i32_0 : i32, i32, i32
  }
}

</mosaic_0001>

<bundles_post_ra>
// kernel: tpu_custom_call.1
= control target key start
LH: loop header
LB: loop body
LE: loop exit
PB: predicated region body
PF: predicated region fallthrough
CT: control target
= control target key end

     0   :  { %s678_s20 = smov 0   ;;  %s680_s21 = smov 0   ;;  %s774_s0 = inlined_call_operand.vmem [shape: f32[2,4,256], index: 0, kind: input, shape index: {}]   ;;  %s775_s1 = inlined_call_operand.vmem [shape: f32[4,64], index: 1, kind: input, shape index: {}]   ;;  %s776_s2 = inlined_call_operand.vmem [shape: f32[1,64], index: 2, kind: input, shape index: {}]   ;;  %s777_s3 = inlined_call_operand.vmem [shape: f32[64,1], index: 3, kind: input, shape index: {}]   ;;  %s778_s4 = inlined_call_operand.<no memory space> [shape: f32[1,1], index: 4, kind: input, shape index: {}]   ;;  %s779_s5 = inlined_call_operand.vmem [shape: f32[2,1,1], index: 5, kind: output, shape index: {}]  }
   0x1   :  { %v10_v0 = vstv %s778_s4  ;;  %s682_s22 = smov 0   ;;  %s684_s23 = smov 0  }
   0x2   :  { %11 = vst [vmem:[#allocation3] sm:$0x1] %v10_v0  ;;  %s686_s24 = smov 0  }
   0x3 LB: > { %s26_s4 = sadd.s32 1, %s632_s22  ;;  %s29_s25 = sadd.s32 1, %s636_s23  ;;  %s640_s24 = sphi %s686_s24, %s17_s24   ;;  %s636_s23 = sphi %s684_s23, %s783_s23   ;;  %s632_s22 = sphi %s682_s22, %s782_s22   ;;  %s628_s21 = sphi %s680_s21, %s781_s21   ;;  %s624_s20 = sphi %s678_s20, %s780_s20  }
   0x4   : > { %p27_p0 = scmp.ge.s32.totalorder %s26_s4, 2  ;;  %p509_p1 = scmp.ge.s32.totalorder %s640_s24, 1 }
   0x5   : > { %p206_p2 = scmp.lt.s32.totalorder %s640_s24, 5 }
   0x6   : > { %s785_s4 = smov (%p27_p0, %s26_s4), 0  ;;  %s787_s25 = smov (!%p27_p0, %s29_s25), %s636_s23 }
   0x7   : > { %p207_p3 = pnand %p509_p1, %p206_p2  ;;  %p31_p4 = scmp.ge.s32.totalorder %s787_s25, 2 }
   0x8   : > { %p235_p5 = scmp.lt.s32.totalorder (!%p207_p3), %s628_s21, 1  ;;  %p237_p6 = scmp.lt.s32.totalorder (!%p207_p3), %s624_s20, 1 }
   0x9   : > { %s789_s25 = smov (%p31_p4, %s787_s25), 0  ;;  %210 = sbr.rel (%p207_p3) target bundleno = 607 (0x25f), region = 40 }
   0xa   : > { %p512_p7 = scmp.ne.s32.totalorder (!%p207_p3), %s624_s20, 0 }
   0xe   : > { %s791_s21 = smov (!%p235_p5, %s628_s21), 1 }
   0xf   : > { %s238_s26 = scalar_select %p237_p6, %s624_s20, 1 }
  0x10   : > { %s510_s27 = sshll.u32 %s791_s21, 1  ;;  %s245_s30 = scalar_lea.vmem %s779_s5, %s791_s21 }
  0x11   : > { %s240_s6 = sadd.s32 %s510_s27, %s238_s26  ;;  %249 = sbr.rel (%p512_p7) target bundleno = 24 (0x18), region = 44 }
  0x12   : > { %s511_s7 = sshll.u32 %s240_s6, 2 }
  0x13   : > { %s242_s10 = scalar_lea.vmem %s774_s0, %s511_s7 }
  0x16   : > { %v642_v1 = vmov -inf  }
  0x17   : > { %250 = vst [vmem:[#allocation2] sm:$0xf] %v642_v1 }
  0x18 PF: > { %v251_v2 = vld [vmem:[%s242_s10] sm:$0xf]  ;;  %p513_p8 = scmp.ne.s32.totalorder %s624_s20, 1 }
  0x1d   : > { %258 = sbr.rel (%p513_p8) target bundleno = 607 (0x25f), region = 48 }
  0x1e   : > { %v252_v3 = vld [vmem:[#allocation2] sm:$0xf] }
  0x1f   : > { %v253_v4 = vmax.f32 %v252_v3, %v251_v2 }
  0x21   : > { %254 = vst [vmem:[#allocation2] sm:$0xf] %v253_v4 }
  0x22   : > { %vm260_vm0 = vcmask 1043456   ;;  %v643_v7 = vmov 0.0   ;;  %v264_v8 = vld [vmem:[%s775_s1] sm:$0xf]  ;;  %vm644_vm1 = vmmov 0   ;;  %v357_v9 = vld [vmem:[%s777_s3 + $0x38] sm:$0xff]  ;;  %v267_v14 = vlaneseq }
  0x23   : > { %531 = vmatprep.subr.mxu0 %v643_v7  ;;  %536 = vmatprep.subr.mxu1 %v643_v7  ;;  %v356_v10 = vld [vmem:[%s777_s3 + $0x30] sm:$0xff]  ;;  %v355_v11 = vld [vmem:[%s777_s3 + $0x28] sm:$0xff]  ;;  %v354_v12 = vld [vmem:[%s777_s3 + $0x20] sm:$0xff]  ;;  %vm273_vm2 = vcmask 31744   ;;  %vm359_vm3 = vcmask 523264   ;;  %vm439_vm4 = vcmask 0  }
  0x24   : > { %532 = vmatpush3.msk.msra.mxu0 %vm260_vm0, %v264_v8  ;;  %533 = vmatprep.mubr.msk.f32.mxu0 %vm644_vm1, %v643_v7  ;;  %v353_v13 = vld [vmem:[%s777_s3 + $0x18] sm:$0xff]  ;;  %v268_v15 = vand.u32 127, %v267_v14  ;;  %v270_v16 = vshrl.u32 %v267_v14, 7  ;;  %v352_v20 = vld [vmem:[%s777_s3 + $0x10] sm:$0xff]  ;;  %v351_v21 = vld [vmem:[%s777_s3 + $0x8] sm:$0xff] }
  0x25   : > { %552 = vmatprep.mubr.msk.f32.mxu1 %vm644_vm1, %v643_v7  ;;  %537 = vmatpush3.msra.mxu1 %v357_v9  ;;  %v350_v22 = vld [vmem:[%s777_s3] sm:$0xff] }
  0x26   : > { %538 = vmatprep.subr.mxu1 %v643_v7  ;;  %v271_v17 = vsub.s32 %v268_v15, %v270_v16  ;;  %v265_v23 = vld [vmem:[%s776_s2] sm:$0x1]  ;;  %v358_v28 = vld [vmem:[#allocation3] sm:$0x1] }
  0x27   : > { %539 = vmatpush3.msra.mxu1 %v356_v10 }
  0x28   : > { %v259_v5 = vld [vmem:[#allocation2] sm:$0xf]  ;;  %540 = vmatprep.subr.mxu1 %v643_v7 }
  0x29   : > { %v261_v6 = vsel %vm260_vm0, %v259_v5, -inf  ;;  %541 = vmatpush3.msra.mxu1 %v355_v11 }
  0x2a   : > { %262 = vmax.xlane.f32.xlu0 %v261_v6  ;;  %542 = vmatprep.subr.mxu1 %v643_v7 }
  0x2b   : > { %543 = vmatpush3.msra.mxu1 %v354_v12 }
  0x2c   : > { %544 = vmatprep.subr.mxu1 %v643_v7 }
  0x2d   : > { %545 = vmatpush3.msra.mxu1 %v353_v13 }
  0x2e   : > { %546 = vmatprep.subr.mxu1 %v643_v7 }
  0x2f   : > { %547 = vmatpush3.msra.mxu1 %v352_v20 }
  0x30   : > { %548 = vmatprep.subr.mxu1 %v643_v7 }
  0x31   : > { %549 = vmatpush3.msra.mxu1 %v351_v21 }
  0x32   : > { %550 = vmatprep.subr.mxu1 %v643_v7 }
  0x33   : > { %551 = vmatpush3.msra.mxu1 %v350_v22 }
  0xb3   : > { %v263_v18 = vpop.xlane.xlu0 %262 }
  0xb4   : > { %v272_v19 = vrot.slane %v263_v18, %v271_v17 }
  0xb6   : > { %534 = vmatmul.mubr.msk.f32.vlgmr.msra.gmra.mxu0 %vm273_vm2, %v272_v19 }
 0x176   : > { %v345_v24 = vpop.f32.mrf.mxu0 }
 0x177   : > { %v346_v25 = vadd.f32 %v345_v24, %v265_v23 }
 0x178   : > { %v535_v26 = vpop.f32.mrf.mxu0 }
 0x179   : > { %v349_v27 = vmax.f32 %v346_v25, 0.0 }
 0x17b   : > { %553 = vmatmul.mubr.msk.f32.vlgmr.msra.gmra.mxu1 %vm359_vm3, %v349_v27 }
 0x23b   : > { %v429_v29 = vpop.f32.mrf.mxu1 }
 0x23c   : > { %v430_v30 = vadd.f32 %v429_v29, %v358_v28 }
 0x23d   : > { %v554_v31 = vpop.f32.mrf.mxu1 }
 0x23e   : > { %v517_v32 = vmul.f32 -1.442695, %v430_v30 }
 0x240   : > { %598 = vpow2.f32 %v517_v32 }
 0x24d   : > { %v599_v33 = vpop.eup %598 }
 0x24e   : > { %v436_v34 = vadd.f32 1.0, %v599_v33 }
 0x250   : > { %600 = vrcp.f32 %v436_v34 }
 0x25d   : > { %v601_v35 = vpop.eup %600 }
 0x25e   : > { %440 = vst.msk [vmem:[%s245_s30] sm:$0x1] %vm439_vm4, %v601_v35 }
 0x25f PF: > { %s17_s24 = sadd.s32 1, %s640_s24   ;;  %s780_s20 = smov %s632_s22 }
 0x260   : > { %p14_p9 = scmp.ge.s32.totalorder %s17_s24, 6   ;;  %s781_s21 = smov %s636_s23 }
 0x261   : > { %s782_s22 = smov %s785_s4  ;;  %s783_s23 = smov %s789_s25 }
 0x262   :  { %16 = sbr.rel (!%p14_p9) target bundleno = 3 (0x3), region = 78 }

</bundles_post_ra>
